<compile_context>
chip_gen: v7x
topology: tpu7x:2x2x1
jax: 0.10.0
libtpu: 0.0.40
codegen_flags: <defaults>
</compile_context>

<pallas_src>
from typing import NamedTuple, Optional

import jax
import jax.numpy as jnp
from jax.experimental import pallas as pl
from jax.experimental.pallas import tpu as pltpu


# ----------------------------- kernels ------------------------------------- #

def _matmul_kernel(x_ref, w_ref, o_ref):
    # x_ref: (TM, K), w_ref: (K, TN), o_ref: (TM, TN); f32 MXU accumulation.
    o_ref[...] = jnp.dot(
        x_ref[...], w_ref[...], preferred_element_type=jnp.float32
    ).astype(o_ref.dtype)


def _matmul_bias_kernel(x_ref, w_ref, b_ref, o_ref):
    # Same, with the (1, TN) bias fused into the f32 accumulator epilogue.
    acc = jnp.dot(x_ref[...], w_ref[...], preferred_element_type=jnp.float32)
    acc = acc + b_ref[...].astype(jnp.float32)
    o_ref[...] = acc.astype(o_ref.dtype)


# --------------------- parameter preparation (hoisted) ---------------------- #

class GroupLinearParams(NamedTuple):
    mode: str                      # "grouped" | "fused"
    n_groups: int
    in_groups: int
    out_groups: int
    w: jax.Array                   # grouped: (g, gi, go); fused: (N, M)
    b: Optional[jax.Array]         # grouped: (g, 1, go);  fused: (1, M)
    use_shuffle: bool


def _block_diag_weights(weights, use_shuffle):
    """(g, gi, go) -> block-diagonal (g*gi, g*go); shuffle baked into columns."""
    g, gi, go = weights.shape
    n, m = g * gi, g * go
    wbd = jnp.zeros((g, gi, g, go), dtype=weights.dtype)
    idx = jnp.arange(g)
    wbd = wbd.at[idx, :, idx, :].set(weights)
    wbd = wbd.reshape(n, m)
    if use_shuffle:
        # old column gidx*go + o  ->  new column o*g + gidx
        wbd = wbd.reshape(n, g, go).transpose(0, 2, 1).reshape(n, m)
    return wbd


def _flatten_bias(bias, use_shuffle):
    g, _, go = bias.shape
    b = bias.reshape(g, go)
    if use_shuffle:
        b = b.T
    return b.reshape(1, g * go)


def prepare_group_linear_params(weights, bias=None, use_shuffle=False):
    """Precompute kernel-ready parameters.

    Call ONCE per parameter update and reuse across forward calls: rebuilding
    the fused block-diagonal (N, M) slab per call is pure HBM overhead.
    """
    weights = jnp.asarray(weights)
    g, gi, go = weights.shape
    if bias is not None:
        bias = jnp.asarray(bias)
    grouped = (not use_shuffle) and gi >= 128 and go >= 128 \
        and gi % 128 == 0 and go % 128 == 0
    if grouped:
        b = None if bias is None else bias.reshape(g, 1, go)
        return GroupLinearParams("grouped", g, gi, go, weights, b, False)
    w_bd = _block_diag_weights(weights, use_shuffle)
    b = None if bias is None else _flatten_bias(bias, use_shuffle)
    return GroupLinearParams("fused", g, gi, go, w_bd, b, bool(use_shuffle))


# ------------------------------ tile sizing --------------------------------- #

def _vmem_budget():
    """(tile budget, vmem_limit cap) derived from the chip's VMEM capacity."""
    cap = 64 * 1024 * 1024
    try:
        info = pltpu.get_tpu_info()
        cap = int(getattr(info, "vmem_capacity_bytes", cap))
    except Exception:
        pass
    if cap >= 100 * 1024 * 1024:                        # v5e / v6e: 128 MiB VMEM
        return 56 * 1024 * 1024, 96 * 1024 * 1024
    return 22 * 1024 * 1024, 40 * 1024 * 1024           # v7x: 64 MiB physical


def _round_down(v, m):
    return (v // m) * m


def _pick_tm(bsz, avail_bytes, per_row_bytes):
    tm = max(int(avail_bytes // max(per_row_bytes, 1)), 1)
    tm = min(tm, 2048)
    if bsz >= 256:
        # Guarantee >= 2 batch tiles so the parallel batch axis can shard
        # across both TensorCores on v7x (megacore on v5e/v6e).
        tm = min(tm, max(_round_down(bsz // 2, 128), 128))
    if tm >= bsz:
        return int(bsz)                    # full-dim block (any size is legal)
    if tm >= 256:
        return int(_round_down(tm, 256))   # MXU-row aligned; multiple of 8/16/32 packs
    if tm >= 128:
        return 128
    return int(max(_round_down(tm, 8), 8))


def _pick_tn(n, m, w_item, budget):
    # Prefer full width: the weight block index is then grid-invariant so the
    # (N, M) weight is DMA'd once and stays resident in VMEM.
    if 2 * n * m * w_item <= int(0.7 * budget):
        return int(m)
    # Otherwise split output columns into 256-aligned tiles whose
    # (double-buffered) weight slab stays within ~half the budget.
    tn = _round_down(int((budget // 2) // max(2 * n * w_item, 1)), 256)
    tn = max(tn, 256)
    tn = min(tn, _round_down(m, 256)) if m >= 256 else min(tn, m)
    return int(tn)


def _probe_single_buffer():
    if not hasattr(pl, "Buffered"):
        return False
    try:
        pl.BlockSpec((8, 128), lambda i, j: (0, 0), pipeline_mode=pl.Buffered(1))
        return True
    except Exception:
        return False


_HAS_SINGLE_BUFFER = _probe_single_buffer()


def _single_buffer_spec(block_shape, index_map):
    try:
        return pl.BlockSpec(block_shape, index_map, pipeline_mode=pl.Buffered(1))
    except Exception:
        return None


# ------------------------------ pallas launch -------------------------------- #

def _run_pallas(kernel, args, out_shape, grid, in_specs, out_spec, dim_sem,
                vmem_limit, cost, fast_in_specs=None, fast_vmem_limit=None):
    def call(specs, limit):
        return pl.pallas_call(
            kernel,
            out_shape=out_shape,
            grid_spec=pltpu.PrefetchScalarGridSpec(
                num_scalar_prefetch=0,
                grid=grid,
                in_specs=specs,
                out_specs=out_spec,
            ),
            compiler_params=pltpu.CompilerParams(
                dimension_semantics=dim_sem,
                vmem_limit_bytes=int(limit),
            ),
            cost_estimate=cost,
        )(*args)

    if fast_in_specs is not None:
        try:
            return call(fast_in_specs, fast_vmem_limit)
        except Exception:
            pass  # fall back to default double-buffered specs
    return call(in_specs, vmem_limit)


# ------------------------------ forward paths -------------------------------- #

def _fused_forward(x2, p):
    """x2:(bsz, N) @ block-diagonal (N, M) weight, bias/shuffle pre-folded."""
    bsz, n_feat = x2.shape
    m_feat = p.n_groups * p.out_groups
    w, b = p.w, p.b
    x_item = jnp.dtype(x2.dtype).itemsize
    w_item = jnp.dtype(w.dtype).itemsize
    budget, limit_cap = _vmem_budget()

    tn = _pick_tn(n_feat, m_feat, w_item, budget)
    nj = pl.cdiv(m_feat, tn)
    w_tile_bytes = n_feat * tn * w_item
    # Single-buffer the weight only when its block index is grid-invariant and
    # the tile is big enough for the saved VMEM to matter.
    use_single_buf = (nj == 1) and _HAS_SINGLE_BUFFER and w_tile_bytes >= (1 << 20)
    w_buf = 1 if use_single_buf else 2

    per_row = 2 * (n_feat + tn) * x_item          # double-buffered x row + out row
    avail = max(budget - w_buf * w_tile_bytes, budget // 8)
    tm = _pick_tm(bsz, avail, per_row)
    nb = pl.cdiv(bsz, tm)

    # Grid order: when the output columns must be tiled, re-read whichever of
    # {weight, activations} costs fewer redundant HBM bytes.
    batch_major = (nj == 1) or (
        nb * n_feat * m_feat * w_item <= nj * bsz * n_feat * x_item)
    if batch_major:
        grid = (nb, nj)
        x_map = lambda i, j: (i, 0)
        w_map = lambda i, j: (0, j)
        o_map = lambda i, j: (i, j)
        b_map = lambda i, j: (0, j)
    else:
        grid = (nj, nb)
        x_map = lambda j, i: (i, 0)
        w_map = lambda j, i: (0, j)     # resident across the inner batch loop
        o_map = lambda j, i: (i, j)
        b_map = lambda j, i: (0, j)

    x_spec = pl.BlockSpec((tm, n_feat), x_map)
    w_spec = pl.BlockSpec((n_feat, tn), w_map)
    o_spec = pl.BlockSpec((tm, tn), o_map)

    if b is None:
        kernel = _matmul_kernel
        in_specs = [x_spec, w_spec]
        args = (x2, w)
    else:
        kernel = _matmul_bias_kernel
        in_specs = [x_spec, w_spec, pl.BlockSpec((1, tn), b_map)]
        args = (x2, w, b)

    fast_in_specs = None
    if use_single_buf:
        w_spec_sb = _single_buffer_spec((n_feat, tn), w_map)
        if w_spec_sb is not None:
            fast_in_specs = list(in_specs)
            fast_in_specs[1] = w_spec_sb

    def _foot(wb):
        return (wb * w_tile_bytes
                + 2 * tm * n_feat * x_item
                + 2 * tm * tn * x_item
                + 2 * tn * 4)

    vmem_safe = min(limit_cap, max(16 << 20, _foot(2) + (2 << 20)))
    vmem_fast = min(limit_cap, max(16 << 20, _foot(w_buf) + (2 << 20)))

    cost = pl.CostEstimate(
        flops=2 * bsz * n_feat * m_feat,
        transcendentals=0,
        bytes_accessed=(bsz * n_feat * x_item + n_feat * m_feat * w_item
                        + bsz * m_feat * x_item
                        + (0 if b is None else m_feat * jnp.dtype(b.dtype).itemsize)),
    )

    # TODO(synk): if in_features were so large that a (TM, N) + (N, TN) pair cannot
    # fit in VMEM, an extra contraction-axis grid dim would be needed; typical PRU
    # sizes fit comfortably.
    out_shape = jax.ShapeDtypeStruct((bsz, m_feat), x2.dtype)
    return _run_pallas(kernel, args, out_shape, grid, in_specs, o_spec,
                       ("parallel", "parallel"), vmem_safe, cost,
                       fast_in_specs=fast_in_specs, fast_vmem_limit=vmem_fast)


def _grouped_forward(x2, p):
    """Per-group grid on the natural (g, gi, go) weights (no zero-block flops)."""
    bsz, n_feat = x2.shape
    g, gi, go = p.n_groups, p.in_groups, p.out_groups
    m_feat = g * go
    w, b = p.w, p.b
    x_item = jnp.dtype(x2.dtype).itemsize
    w_item = jnp.dtype(w.dtype).itemsize
    budget, limit_cap = _vmem_budget()

    w_tile_bytes = gi * go * w_item
    per_row = 2 * (gi + go) * x_item
    avail = max(budget - 2 * w_tile_bytes, budget // 8)
    tm = _pick_tm(bsz, avail, per_row)
    nb = pl.cdiv(bsz, tm)

    # Groups on the OUTER grid axis: for a fixed group the (gi, go) weight block
    # stays resident across the inner batch loop, so every operand (x, weight,
    # bias, output) is DMA'd exactly once -- zero redundant HBM traffic.
    grid = (g, nb)
    x_spec = pl.BlockSpec((tm, gi), lambda gr, i: (i, gr))
    w_spec = pl.BlockSpec((None, gi, go), lambda gr, i: (gr, 0, 0))
    o_spec = pl.BlockSpec((tm, go), lambda gr, i: (i, gr))

    if b is None:
        kernel = _matmul_kernel
        in_specs = [x_spec, w_spec]
        args = (x2, w)
    else:
        kernel = _matmul_bias_kernel
        in_specs = [x_spec, w_spec,
                    pl.BlockSpec((None, 1, go), lambda gr, i: (gr, 0, 0))]
        args = (x2, w, b)

    foot = (2 * w_tile_bytes + 2 * tm * gi * x_item + 2 * tm * go * x_item
            + 2 * go * 4)
    vmem_limit = min(limit_cap, max(16 << 20, foot + (2 << 20)))

    cost = pl.CostEstimate(
        flops=2 * bsz * g * gi * go,
        transcendentals=0,
        bytes_accessed=(bsz * n_feat * x_item + g * gi * go * w_item
                        + bsz * m_feat * x_item
                        + (0 if b is None else g * go * jnp.dtype(b.dtype).itemsize)),
    )

    out_shape = jax.ShapeDtypeStruct((bsz, m_feat), x2.dtype)
    return _run_pallas(kernel, args, out_shape, grid, in_specs, o_spec,
                       ("parallel", "parallel"), vmem_limit, cost)


# --------------------------------- forward ----------------------------------- #

def group_linear(x, params: GroupLinearParams):
    """Forward pass matching GroupLinear.forward (norm_type=None).

    x: [..., in_features] (2-D [B, N] or 3-D [T, B, N]).  `params` must come from
    prepare_group_linear_params() -- hoist that call; do NOT rebuild it per step.
    """
    n_feat = params.n_groups * params.in_groups
    m_feat = params.n_groups * params.out_groups
    assert x.shape[-1] == n_feat, (x.shape, n_feat)
    lead = x.shape[:-1]
    bsz = 1
    for d in lead:
        bsz *= int(d)
    x2 = x.reshape(bsz, n_feat)
    if params.mode == "grouped":
        out = _grouped_forward(x2, params)
    else:
        out = _fused_forward(x2, params)
    # TODO(synk): optional LayerNorm (norm_type='ln') not applied here; the default
    # GroupLinear config has norm_type=None so forward semantics match exactly.
    return out.reshape(*lead, m_feat)


def group_linear_forward(x, weights, bias=None, use_shuffle=False):
    """One-shot convenience wrapper (re-prepares params each call; prefer
    prepare_group_linear_params() + group_linear() for repeated use)."""
    return group_linear(x, prepare_group_linear_params(weights, bias, use_shuffle))


# ---------------------------------- test ------------------------------------- #

def _reference(x, weights, bias, use_shuffle):
    """Pure-JAX reference (same math as the torch.bmm path)."""
    g, gi, go = weights.shape
    lead = x.shape[:-1]
    bsz = 1
    for d in lead:
        bsz *= int(d)
    xg = x.reshape(bsz, g, gi).transpose(1, 0, 2)          # (g, bsz, gi)
    r = jnp.einsum("gbi,gio->gbo", xg, weights)            # (g, bsz, go)
    if bias is not None:
        r = r + bias
    if use_shuffle:
        out = r.transpose(1, 2, 0).reshape(bsz, g * go)
    else:
        out = r.transpose(1, 0, 2).reshape(bsz, g * go)
    return out.reshape(*lead, g * go)


if __name__ == "__main__":
    key = jax.random.PRNGKey(0)
    k1, k2, k3, k4, k5 = jax.random.split(key, 5)

    # --- small PRU-style shapes (fused block-diagonal path) ---
    T, B, N, OUT, G = 8, 2, 32, 32, 4
    gi, go = N // G, OUT // G
    x = jax.random.normal(k1, (T, B, N), dtype=jnp.float32)
    w = jax.random.normal(k2, (G, gi, go), dtype=jnp.float32) * 0.2
    bias = jax.random.normal(k3, (G, 1, go), dtype=jnp.float32)

    # Case 1: default config (no bias, no shuffle).  Params prepared once, reused.
    p1 = prepare_group_linear_params(w, bias=None, use_shuffle=False)
    assert p1.mode == "fused"
    y1 = jax.block_until_ready(group_linear(x, p1))
    ref1 = _reference(x, w, None, False)
    assert y1.shape == (T, B, OUT), y1.shape
    assert jnp.allclose(y1, ref1, atol=1e-5, rtol=1e-5), "mismatch (no bias / no shuffle)"

    # Case 2: bias + feature shuffle (permutation folded into the weight columns).
    p2 = prepare_group_linear_params(w, bias=bias, use_shuffle=True)
    y2 = jax.block_until_ready(group_linear(x, p2))
    ref2 = _reference(x, w, bias, True)
    assert y2.shape == (T, B, OUT), y2.shape
    assert jnp.allclose(y2, ref2, atol=1e-5, rtol=1e-5), "mismatch (bias + shuffle)"

    # Case 3: MXU-sized groups -> per-group grid path (no zero-block flops).
    T3, B3, N3, OUT3, G3 = 8, 4, 256, 256, 2
    gi3, go3 = N3 // G3, OUT3 // G3
    x3 = jax.random.normal(k4, (T3, B3, N3), dtype=jnp.float32)
    w3 = jax.random.normal(k5, (G3, gi3, go3), dtype=jnp.float32) * 0.05
    b3 = jnp.full((G3, 1, go3), 0.5, dtype=jnp.float32)
    p3 = prepare_group_linear_params(w3, bias=b3, use_shuffle=False)
    assert p3.mode == "grouped"
    y3 = jax.block_until_ready(group_linear(x3, p3))
    ref3 = _reference(x3, w3, b3, False)
    assert y3.shape == (T3, B3, OUT3), y3.shape
    assert jnp.allclose(y3, ref3, atol=1e-3, rtol=1e-3), "mismatch (grouped path)"

    print("KERNEL_OK")
</pallas_src>

<mosaic_0001>
module attributes {stable_mosaic.version = 11 : i64} {
  func.func @_matmul_kernel(%arg0: i32, %arg1: i32, %arg2: memref<16x32xf32, #tpu.memory_space<vmem>>, %arg3: memref<32x32xf32, #tpu.memory_space<vmem>>, %arg4: memref<16x32xf32, #tpu.memory_space<vmem>>) attributes {dimension_semantics = [#tpu.dimension_semantics<parallel>, #tpu.dimension_semantics<parallel>], iteration_bounds = array<i64: 1, 1>, scalar_prefetch = 0 : i64, scratch_operands = 0 : i64, tpu.core_type = #tpu.core_type<tc>, window_params = [{transform_indices = @transform_0, window_bounds = array<i64: 16, 32>}, {transform_indices = @transform_1, window_bounds = array<i64: 32, 32>}, {transform_indices = @transform_2, window_bounds = array<i64: 16, 32>}]} {
    %c0 = arith.constant 0 : index
    %c0_0 = arith.constant 0 : index
    %0 = vector.load %arg2[%c0, %c0_0] : memref<16x32xf32, #tpu.memory_space<vmem>>, vector<16x32xf32>
    %c0_1 = arith.constant 0 : index
    %c0_2 = arith.constant 0 : index
    %1 = vector.load %arg3[%c0_1, %c0_2] : memref<32x32xf32, #tpu.memory_space<vmem>>, vector<32x32xf32>
    %cst = arith.constant dense<0.000000e+00> : vector<16x32xf32>
    %2 = tpu.matmul %0, %1, %cst {dimension_numbers = #tpu.dot_dimension_numbers<[1], [0], [0], [1], [0, 0, 1, 1], [], []>} : vector<16x32xf32>, vector<32x32xf32>, vector<16x32xf32> -> vector<16x32xf32>
    %c0_3 = arith.constant 0 : index
    %c0_4 = arith.constant 0 : index
    %3 = vector.load %arg4[%c0_3, %c0_4] : memref<16x32xf32, #tpu.memory_space<vmem>>, vector<16x32xf32>
    tpu.vector_store %arg4[%c0_3, %c0_4], %2 {strides = array<i32>} : memref<16x32xf32, #tpu.memory_space<vmem>>, vector<16x32xf32>,
    return
  }
  func.func @transform_0(%arg0: i32, %arg1: i32) -> (i32, i32) {
    %c0_i32 = arith.constant 0 : i32
    %c0_i32_0 = arith.constant 0 : i32
    return %arg0, %c0_i32 : i32, i32
  }
  func.func @transform_1(%arg0: i32, %arg1: i32) -> (i32, i32) {
    %c0_i32 = arith.constant 0 : i32
    %c0_i32_0 = arith.constant 0 : i32
    return %c0_i32, %arg1 : i32, i32
  }
  func.func @transform_2(%arg0: i32, %arg1: i32) -> (i32, i32) {
    %c0_i32 = arith.constant 0 : i32
    return %arg0, %arg1 : i32, i32
  }
}

</mosaic_0001>

<bundles_post_ra>
// kernel: tpu_custom_call.1
= control target key start
LH: loop header
LB: loop body
LE: loop exit
PB: predicated region body
PF: predicated region fallthrough
CT: control target
= control target key end

     0   :  { %7 = vsyncpa [#allocation3], 0  ;;  %s321_s0 = inlined_call_operand.hbm [shape: f32[16,32], index: 0, kind: input, shape index: {}]   ;;  %s322_s1 = inlined_call_operand.hbm [shape: f32[32,32], index: 1, kind: input, shape index: {}]   ;;  %s323_s2 = inlined_call_operand.hbm [shape: f32[16,32], index: 2, kind: output, shape index: {}]  }
   0x1   :  { %8 = vsyncpa [#allocation6], 0 }
   0x2   :  { %9 = vsyncpa [#allocation4], 0  ;;  %s252_s9 = smov [#allocation2]   ;;  %s180_s13 = scalar_lea.hbm %s321_s0, 256 }
   0x3   :  { %s15_s10 = sshll.u32 %s252_s9, 4  ;;  %p181_p0 = scmp.ne.s32.totalorder %s321_s0, %s180_s13  ;;  %s16_s10 = int_to_ptr.vmem [resolvable:$true] %s15_s10 }
   0x4   :  { %p184_p1 = scmp.lt.u32.totalorder %s180_s13, %s321_s0 }
   0x6   :  { %p186_p2 = pnand %p184_p1, %p181_p0 }
   0x8   :  { %189 = shalt.err (!%p186_p2)
}
   0x9   :  { %s190_s18 = scalar_lea.vmem %s16_s10, 256  ;;  %p195_p4 = scmp.lt.s32.totalorder %s16_s10, %s16_s10 }
   0xa   :  { %p191_p3 = scmp.ne.s32.totalorder %s16_s10, %s190_s18  ;;  %p196_p5 = scmp.lt.s32.totalorder %s190_s18, %s190_s18 }
   0xc   :  { %p197_p6 = por %p196_p5, %p195_p4 }
   0xe   :  { %p198_p7 = pnand %p197_p6, %p191_p3 }
  0x10   :  { %201 = shalt.err (!%p198_p7)
}
  0x11   :  { %s253_s19 = smov 128   ;;  %s254_s20 = smov 8  }
  0x12   :  { %21 = dma.hbm_to_vmem [thread:$0]  %s321_s0, 256, %s16_s10, [#allocation3], %s253_s19, %s253_s19, %s254_s20  }
  0x13   :  { %s255_s23 = smov [#allocation5]   ;;  %s202_s27 = scalar_lea.hbm %s322_s1, 512 }
  0x14   :  { %s27_s24 = sshll.u32 %s255_s23, 4  ;;  %p203_p8 = scmp.ne.s32.totalorder %s322_s1, %s202_s27  ;;  %s28_s24 = int_to_ptr.vmem [resolvable:$true] %s27_s24 }
  0x15   :  { %p206_p9 = scmp.lt.u32.totalorder %s202_s27, %s322_s1 }
  0x17   :  { %p208_p10 = pnand %p206_p9, %p203_p8 }
  0x19   :  { %211 = shalt.err (!%p208_p10)
}
  0x1a   :  { %s212_s4 = scalar_lea.vmem %s28_s24, 512  ;;  %p217_p12 = scmp.lt.s32.totalorder %s28_s24, %s28_s24 }
  0x1b   :  { %p213_p11 = scmp.ne.s32.totalorder %s28_s24, %s212_s4  ;;  %p218_p13 = scmp.lt.s32.totalorder %s212_s4, %s212_s4 }
  0x1d   :  { %p219_p0 = por %p218_p13, %p217_p12 }
  0x1f   :  { %p220_p1 = pnand %p219_p0, %p213_p11 }
  0x21   :  { %223 = shalt.err (!%p220_p1)
}
  0x22   :  { %33 = dma.hbm_to_vmem [thread:$0]  %s322_s1, 512, %s28_s24, [#allocation6], %s253_s19, %s253_s19, %s254_s20  }
  0x23   :  { %246 = dma.done.wait [#allocation3], 256  }
  0x24   :  { %247 = vsyncadd [#allocation3], 4294967040 }
  0x25   :  { %248 = dma.done.wait [#allocation6], 512  }
  0x26   :  { %249 = vsyncadd [#allocation6], 4294966784  ;;  %vm46_vm0 = vcmask 261120   ;;  %v42_v0 = vld [vmem:[#allocation5] sm:$0xff]  ;;  %v43_v1 = vld [vmem:[#allocation5 + $0x8] sm:$0xff]  ;;  %s256_s1 = smov [#allocation7]  }
  0x27   :  { %v44_v2 = vld [vmem:[#allocation5 + $0x10] sm:$0xff]  ;;  %v167_v3 = vpack.c.bf16 %v43_v1, %v42_v0  ;;  %v45_v4 = vld [vmem:[#allocation5 + $0x18] sm:$0xff]  ;;  %s135_s6 = sshll.u32 %s256_s1, 4  ;;  %s136_s6 = int_to_ptr.vmem [resolvable:$true] %s135_s6 }
  0x28   :  { %v40_v5 = vld [vmem:[#allocation2] sm:$0xff]  ;;  %v171_v6 = vpack.c.bf16 %v45_v4, %v44_v2  ;;  %v41_v7 = vld [vmem:[#allocation2 + $0x8] sm:$0xff]  ;;  %s224_s7 = scalar_lea.vmem %s136_s6, 256  ;;  %p229_p3 = scmp.lt.s32.totalorder %s136_s6, %s136_s6 }
  0x29   :  { %164 = vmatprep.mubr.msk.f32.mxu0 %vm46_vm0, %v40_v5  ;;  %168 = vmatprep.subr.bf16.mxu0 %v167_v3  ;;  %p225_p2 = scmp.ne.s32.totalorder %s136_s6, %s224_s7  ;;  %p230_p4 = scmp.lt.s32.totalorder %s224_s7, %s224_s7 }
  0x2a   :  { %170 = vmatpush3.bf16.msra.mxu0 %v167_v3 }
  0x2b   :  { %172 = vmatprep.subr.bf16.mxu0 %v171_v6  ;;  %p231_p5 = por %p230_p4, %p229_p3 }
  0x2d   :  { %p232_p6 = pnand %p231_p5, %p225_p2 }
  0x2e   :  { %174 = vmatpush3.bf16.msra.mxu0 %v171_v6 }
  0x31   :  { %165 = vmatmul.mubr.msk.f32.vlgmr.msra.gmra.mrb[0].mxu0 %vm46_vm0, %v41_v7 }
 0x104   :  { %v166_v8 = vpop.f32.mrb[0].mxu0 }
 0x105   :  { %129 = vst.msk [vmem:[#allocation7 + $0x8] sm:$0xff] %vm46_vm0, %v166_v8  ;;  %v119_v9 = vpop.f32.mrb[1].mxu0 }
 0x106   :  { %128 = vst.msk [vmem:[#allocation7] sm:$0xff] %vm46_vm0, %v119_v9 }
 0x107   :  { %235 = shalt.err (!%p232_p6)
}
 0x108   :  { %s236_s10 = scalar_lea.hbm %s323_s2, 256 }
 0x109   :  { %p237_p7 = scmp.ne.s32.totalorder %s323_s2, %s236_s10  ;;  %p240_p8 = scmp.lt.u32.totalorder %s236_s10, %s323_s2 }
 0x10b   :  { %p242_p9 = pnand %p240_p8, %p237_p7 }
 0x10d   :  { %245 = shalt.err (!%p242_p9)
}
 0x10e   :  { %141 = dma.vmem_to_hbm [thread:$0]  %s136_s6, 256, %s323_s2, [#allocation4], %s253_s19, %s253_s19, %s254_s20  }
 0x10f   :  { %250 = dma.done.wait [#allocation4], 256  }
 0x110   :  { %251 = vsyncadd [#allocation4], 4294967040 }
 0x111   :  { %145 = vsyncpa [#allocation3], 1 }
 0x112   :  { %146 = vsyncpa [#allocation6], 1 }
 0x113   :  { %147 = vsyncpa [#allocation4], 1 }

</bundles_post_ra>
